<compile_context>
chip_gen: v6e
topology: v6e:2x2x1
jax: 0.10.0
libtpu: 0.0.40
codegen_flags: <defaults>
</compile_context>

<pallas_src>
import math

import jax
import jax.numpy as jnp
from jax import lax
from jax.experimental import pallas as pl
from jax.experimental.pallas import tpu as pltpu


def _pe_add_kernel(x_ref, o_ref):
    """out = x + PE for one (1, tS, D) tile.

    PE[pos, 2i]   = sin(pos * exp(-2i * ln(10000)/D))
    PE[pos, 2i+1] = cos(pos * exp(-2i * ln(10000)/D))
                  = sin(pos * exp(-2i * ln(10000)/D) + pi/2)
    => exactly one EUP transcendental (sin) per element; the exp runs only over
    a (1, 1, D) row, and all column-only integer math uses single-VALU bitwise
    ops on that row (not the full tile).
    """
    _, tS, D = x_ref.shape

    # --- column-only math: one D-wide row on the lane axis ------------------
    col = lax.broadcasted_iota(jnp.int32, (1, 1, D), 2)
    parity = col & 1                                       # 1 on "cos" columns
    two_i = (col & ~1).astype(jnp.float32)                 # 0,0,2,2,4,4,...
    inv_freq = jnp.exp(two_i * (-math.log(10000.0) / D))   # (1,1,D), D/2 distinct
    phase = parity.astype(jnp.float32) * (math.pi / 2.0)   # cos(x) = sin(x+pi/2)

    # --- row-only math: absolute positions for this sequence tile -----------
    seq_start = pl.program_id(1) * tS
    pos = (seq_start
           + lax.broadcasted_iota(jnp.int32, (1, tS, 1), 1)).astype(jnp.float32)

    angle = pos * inv_freq + phase                         # broadcast -> (1,tS,D)
    pe = jnp.sin(angle)

    # TODO(synk): dropout is stochastic; we implement the eval-mode forward
    # (dropout == identity), matching nn.Dropout in .eval().
    o_ref[...] = (x_ref[...].astype(jnp.float32) + pe).astype(o_ref.dtype)


def _pick_seq_tile(S: int, D: int, itemsize: int,
                   target_bytes: int = 2 << 20) -> int:
    """Largest seq tile whose (tS, D) block is <= ~2 MiB (rows a multiple of 8),
    or the full sequence if it already fits.

    ~2 MiB blocks keep the double-buffered in + out footprint (~8 MiB) well
    inside v5e's 16 MiB scoped-VMEM default and v7x's 64 MiB total VMEM, while
    giving >=512-row tiles for D <= 1024 (measured ~85% of HBM roofline for
    tiled streaming adds), amortizing the ~0.35 us per-grid-step overhead.
    """
    if S * D * itemsize <= target_bytes:
        return S
    rows = (target_bytes // (D * itemsize)) // 8 * 8
    rows = max(8, rows)
    return min(rows, S)


def temporal_positional_encoding(x: jnp.ndarray) -> jnp.ndarray:
    """x: (B, S, D) -> (B, S, D), x + PE[:S] (dropout = identity / eval mode)."""
    B, S, D = x.shape
    tS = _pick_seq_tile(S, D, jnp.dtype(x.dtype).itemsize)
    grid = (B, pl.cdiv(S, tS))
    # NOTE: D is the lane (128-wide) axis; with d_model < 128 lane utilization
    # is D/128 — layout is fixed by the module's (B, S, D) contract.
    return pl.pallas_call(
        _pe_add_kernel,
        out_shape=jax.ShapeDtypeStruct((B, S, D), x.dtype),
        grid_spec=pltpu.PrefetchScalarGridSpec(
            num_scalar_prefetch=0,
            grid=grid,
            in_specs=[pl.BlockSpec((1, tS, D), lambda b, j: (b, j, 0))],
            out_specs=pl.BlockSpec((1, tS, D), lambda b, j: (b, j, 0)),
        ),
        # In-place add: output aliases the input buffer, avoiding a separate
        # (B, S, D) output allocation / copy around the custom call.
        input_output_aliases={0: 0},
        compiler_params=pltpu.CompilerParams(
            # Both grid axes are independent; on v7x the two TensorCores split
            # the (batch, seq-tile) grid, on v5e/v6e this is a plain loop.
            dimension_semantics=("parallel", "parallel"),
        ),
    )(x)


def _reference(x: jnp.ndarray) -> jnp.ndarray:
    """Pure-JAX reference mirroring the PyTorch buffer construction."""
    B, S, D = x.shape
    position = jnp.arange(S, dtype=jnp.float32)[:, None]          # (S, 1)
    div_term = jnp.exp(jnp.arange(0, D, 2, dtype=jnp.float32)
                       * (-math.log(10000.0) / D))                # (D//2,)
    pe = jnp.zeros((S, D), jnp.float32)
    pe = pe.at[:, 0::2].set(jnp.sin(position * div_term))
    pe = pe.at[:, 1::2].set(jnp.cos(position * div_term))
    return x + pe[None, :, :]


if __name__ == "__main__":
    key = jax.random.PRNGKey(0)
    B, S, D = 2, 8, 32                     # batch=2, seq=8, d_model=32
    x = jax.random.normal(key, (B, S, D), dtype=jnp.float32)

    ref = _reference(x)                    # compute before the aliased kernel call

    out = temporal_positional_encoding(x)
    out = jax.block_until_ready(out)

    assert out.shape == (B, S, D)
    assert out.dtype == jnp.float32
    assert jnp.allclose(out, ref, atol=1e-5, rtol=1e-5), "mismatch vs reference"

    print("KERNEL_OK")
</pallas_src>

<mosaic_0001>
module attributes {stable_mosaic.version = 11 : i64} {
  func.func @_pe_add_kernel(%arg0: i32, %arg1: i32, %arg2: memref<1x8x32xf32, #tpu.memory_space<vmem>>, %arg3: memref<1x8x32xf32, #tpu.memory_space<vmem>>) attributes {dimension_semantics = [#tpu.dimension_semantics<parallel>, #tpu.dimension_semantics<parallel>], iteration_bounds = array<i64: 2, 1>, scalar_prefetch = 0 : i64, scratch_operands = 0 : i64, tpu.core_type = #tpu.core_type<tc>, window_params = [{transform_indices = @transform_0, window_bounds = array<i64: 1, 8, 32>}, {transform_indices = @transform_1, window_bounds = array<i64: 1, 8, 32>}]} {
    %0 = tpu.iota {dimensions = array<i32: 2>} : vector<1x1x32xi32>
    %c1_i32 = arith.constant 1 : i32
    %1 = vector.broadcast %c1_i32 : i32 to vector<1x1x32xi32>
    %2 = arith.andi %0, %1 : vector<1x1x32xi32>
    %c-2_i32 = arith.constant -2 : i32
    %3 = vector.broadcast %c-2_i32 : i32 to vector<1x1x32xi32>
    %4 = arith.andi %0, %3 : vector<1x1x32xi32>
    %5 = arith.sitofp %4 : vector<1x1x32xi32> to vector<1x1x32xf32>
    %cst = arith.constant -0.287823141 : f32
    %6 = vector.broadcast %cst : f32 to vector<1x1x32xf32>
    %7 = arith.mulf %5, %6 : vector<1x1x32xf32>
    %8 = math.exp %7 : vector<1x1x32xf32>
    %9 = arith.sitofp %2 : vector<1x1x32xi32> to vector<1x1x32xf32>
    %cst_0 = arith.constant 1.57079637 : f32
    %10 = vector.broadcast %cst_0 : f32 to vector<1x1x32xf32>
    %11 = arith.mulf %9, %10 : vector<1x1x32xf32>
    %c8_i32 = arith.constant 8 : i32
    %12 = arith.muli %arg1, %c8_i32 : i32
    %13 = tpu.iota {dimensions = array<i32: 1>} : vector<1x8x1xi32>
    %14 = vector.broadcast %12 : i32 to vector<1x8x1xi32>
    %15 = arith.addi %14, %13 : vector<1x8x1xi32>
    %16 = arith.sitofp %15 : vector<1x8x1xi32> to vector<1x8x1xf32>
    %17 = vector.broadcast %16 : vector<1x8x1xf32> to vector<1x8x32xf32>
    %18 = vector.broadcast %8 : vector<1x1x32xf32> to vector<1x8x32xf32>
    %19 = arith.mulf %17, %18 : vector<1x8x32xf32>
    %20 = vector.broadcast %11 : vector<1x1x32xf32> to vector<1x8x32xf32>
    %21 = arith.addf %19, %20 : vector<1x8x32xf32>
    %22 = math.sin %21 : vector<1x8x32xf32>
    %c0 = arith.constant 0 : index
    %c0_1 = arith.constant 0 : index
    %c0_2 = arith.constant 0 : index
    %23 = vector.load %arg2[%c0, %c0_1, %c0_2] : memref<1x8x32xf32, #tpu.memory_space<vmem>>, vector<1x8x32xf32>
    %24 = arith.addf %23, %22 : vector<1x8x32xf32>
    %c0_3 = arith.constant 0 : index
    %c0_4 = arith.constant 0 : index
    %c0_5 = arith.constant 0 : index
    %25 = vector.load %arg3[%c0_3, %c0_4, %c0_5] : memref<1x8x32xf32, #tpu.memory_space<vmem>>, vector<1x8x32xf32>
    tpu.vector_store %arg3[%c0_3, %c0_4, %c0_5], %24 {strides = array<i32>} : memref<1x8x32xf32, #tpu.memory_space<vmem>>, vector<1x8x32xf32>,
    return
  }
  func.func @transform_0(%arg0: i32, %arg1: i32) -> (i32, i32, i32) {
    %c0_i32 = arith.constant 0 : i32
    %c0_i32_0 = arith.constant 0 : i32
    return %arg0, %arg1, %c0_i32 : i32, i32, i32
  }
  func.func @transform_1(%arg0: i32, %arg1: i32) -> (i32, i32, i32) {
    %c0_i32 = arith.constant 0 : i32
    %c0_i32_0 = arith.constant 0 : i32
    return %arg0, %arg1, %c0_i32 : i32, i32, i32
  }
}

</mosaic_0001>

<bundles_post_ra>
// kernel: tpu_custom_call.1
= control target key start
LH: loop header
LB: loop body
LE: loop exit
PB: predicated region body
PF: predicated region fallthrough
CT: control target
= control target key end

     0   :  { %6 = vsyncpa [#allocation3], 0  ;;  %s761_s0 = inlined_call_operand.hbm [shape: f32[2,8,32], index: 0, kind: input, shape index: {}, may-alias: {0,1}]   ;;  %s762_s1 = inlined_call_operand.hbm [shape: f32[2,8,32], index: 1, kind: output, shape index: {}, may-alias: {0,1}]  }
   0x1   :  { %8 = vsyncpa [#allocation3 + $0x1], 0 }
   0x2   :  { %9 = vsyncpa [#allocation4], 0 }
   0x3   :  { %11 = vsyncpa [#allocation4 + $0x1], 0  ;;  %s593_s6 = smov 0   ;;  %s595_s7 = smov 0  }
   0x4   :  { %s597_s8 = smov 0   ;;  %s599_s9 = smov 0  }
   0x5   :  { %s601_s10 = smov 0   ;;  %s603_s11 = smov 0  }
   0x6 LB: > { %s370_s12 = sadd.s32 4294967295, %s573_s11   ;;  %s371_s13 = sadd.s32 4294967294, %s573_s11   ;;  %s573_s11 = sphi %s603_s11, %s17_s11   ;;  %s569_s10 = sphi %s601_s10, %s774_s10   ;;  %s565_s9 = sphi %s599_s9, %s773_s9   ;;  %s561_s8 = sphi %s597_s8, %s772_s8   ;;  %s557_s7 = sphi %s595_s7, %s771_s7   ;;  %s553_s6 = sphi %s593_s6, %s770_s6  }
   0x7   : > { %s29_s14 = sadd.s32 1, %s569_s10  ;;  %s38_s15 = sadd.s32 1, %s561_s8 }
   0x8   : > { %p31_p0 = scmp.ge.s32.totalorder %s29_s14, 2  ;;  %p45_p1 = scmp.ne.s32.totalorder %s561_s8, %s557_s7 }
   0x9   : > { %p46_p2 = scmp.eq.s32.totalorder %s573_s11, 0  ;;  %p51_p3 = scmp.ne.s32.totalorder %s557_s7, %s553_s6 }
   0xa   : > { %s776_s14 = smov (%p31_p0, %s29_s14), 0  ;;  %p52_p5 = scmp.eq.s32.totalorder %s370_s12, 0 }
   0xb   : > { %p634_p4 = por %p46_p2, %p45_p1  ;;  %s33_s17 = ssub.s32 %s569_s10, %s776_s14 }
   0xc   : > { %p77_p6 = scmp.eq.s32.totalorder %s370_s12, 1  ;;  %p36_p7 = scmp.eq.s32.totalorder %s33_s17, 0 }
   0xd   : > { %p640_p8 = por %p52_p5, %p51_p3  ;;  %p83_p10 = scmp.eq.s32.totalorder %s371_s13, 1 }
   0xe   : > { %p644_p9 = por %p77_p6, %p45_p1  ;;  %p403_p13 = scmp.lt.s32.totalorder %s573_s11, 2 }
   0xf   : > { %s649_s20 = scalar_select %p36_p7, %s561_s8, %s38_s15  }
  0x10   : > { %p651_p11 = por %p83_p10, %p51_p3  ;;  %s103_s22 = sand.u32 1, %s561_s8  }
  0x11   : > { %s374_s23 = sshll.u32 %s103_s22, 3  ;;  %s375_s24 = sshll.u32 %s569_s10, 7 }
  0x12   : > { %s766_s21 = scalar_select %p651_p11, 1, 0 }
  0x13   : > { %s113_s27 = scalar_lea.hbm %s761_s0, %s375_s24  ;;  %s107_s28 = scalar_lea.vmem [#allocation2], %s374_s23 }
  0x14   : > { %s115_s29 = sshll.u32 %s107_s28, 4  ;;  %p664_p0 = pnand %p403_p13, %p634_p4  ;;  %s116_s29 = int_to_ptr.vmem [resolvable:$true] %s115_s29 }
  0x15   : > { %p376_p1 = scmp.ge.s32.totalorder %s573_s11, 1  ;;  %p120_p2 = scmp.lt.s32.totalorder %s573_s11, 3 }
  0x16   : > { %s104_s2 = scalar_lea.sflag [#allocation3], %s103_s22  ;;  %p467_p3 = pneg %p664_p0 }
  0x17   : > { %s478_s3 = scalar_lea.vmem %s116_s29, 128  ;;  %s575_s4 = smov [#allocation2]  }
  0x18   : > { %p479_p5 = scmp.ne.s32.totalorder %s116_s29, %s478_s3  ;;  %s483_s5 = sshll.u32 %s575_s4, 4  ;;  %s484_s5 = int_to_ptr.vmem [resolvable:$false] %s483_s5 }
  0x19   : > { %s485_s12 = scalar_lea.vmem %s484_s5, 256  ;;  %p486_p10 = scmp.lt.s32.totalorder %s116_s29, %s484_s5 }
  0x1a   : > { %p481_p6 = pnand %p479_p5, %p467_p3  ;;  %p487_p12 = scmp.lt.s32.totalorder %s485_s12, %s478_s3 }
  0x1c   : > { %p482_p7 = pneg %p481_p6  ;;  %p488_p4 = por %p487_p12, %p486_p10 }
  0x1e   : > { %p489_p13 = pnand %p488_p4, %p482_p7 }
  0x20   : > { %492 = shalt.err (!%p489_p13)
}
  0x21   : > { %398 = dma.hbm_to_vmem [thread:$0]  (!%p664_p0), %s113_s27, 128, %s116_s29, %s104_s2  }
  0x22   : > { %p121_p11 = pnand %p376_p1, %p120_p2 }
  0x23   : > { %s679_s13 = sand.u32 (!%p121_p11), 1, %s557_s7  }
  0x24   : > { %124 = sbr.rel (%p121_p11) target bundleno = 170 (0xaa), region = 24  ;;  %s377_s15 = sshll.u32 (!%p121_p11), %s679_s13, 3 }
  0x25   : > { %s127_s16 = scalar_lea.sflag (!%p121_p11), [#allocation3], %s679_s13  ;;  %s685_s17 = scalar_lea.vmem (!%p121_p11), [#allocation2], %s377_s15 }
  0x29   : > { %544 = dma.done.wait (%p640_p8), %s127_s16, 128  }
  0x2a   : > { %546 = vsyncadd (%p640_p8), %s127_s16, 4294967168  ;;  %v149_v0 = vlaneseq  ;;  %v576_v25 = vmov 683565275   ;;  %v577_v27 = vmov 2475754826   ;;  %s148_s18 = scalar_lea.vmem [#allocation5], %s377_s15 }
  0x2b   : > { %v578_v29 = vmov 2131351028   ;;  %v579_v31 = vmov 2102212464   ;;  %v580_v33 = vmov 920167782  }
  0x2c   : > { %v150_v1 = vand.u32 127, %v149_v0  ;;  %v161_v7 = vshrl.u32 %v149_v0, 7  ;;  %v581_v40 = vmov 1326507024   ;;  %s290_s22 = sshll.u32 %s148_s18, 4  ;;  %s384_s23 = sshll.u32 %s565_s9, 7  ;;  %s716_s22 = int_to_ptr.vmem [resolvable:$true] %s290_s22 }
  0x2d   : > { %vm273_vm13 = vcmask 261120   ;;  %s288_s26 = scalar_lea.hbm %s762_s1, %s384_s23  ;;  %s276_s27 = scalar_lea.sflag [#allocation4], %s679_s13 }
  0x2e   : > { %v152_v2 = vand.u32 4294967294, %v150_v1  ;;  %v151_v6 = vand.u32 1, %v150_v1  ;;  %v164_v9 = vcvt.s32.f32 %v161_v7  ;;  %s493_s28 = scalar_lea.vmem %s716_s22, 128  ;;  %s582_s9 = smov [#allocation5]  }
  0x2f   : > { %p494_p8 = scmp.ne.s32.totalorder %s716_s22, %s493_s28  ;;  %s497_s29 = sshll.u32 %s582_s9, 4  ;;  %s498_s29 = int_to_ptr.vmem [resolvable:$false] %s497_s29 }
  0x30   : > { %v153_v3 = vcvt.s32.f32 %v152_v2  ;;  %v157_v8 = vcvt.s32.f32 %v151_v6  ;;  %s499_s30 = scalar_lea.vmem %s498_s29, 256  ;;  %p500_p0 = scmp.lt.s32.totalorder %s716_s22, %s498_s29 }
  0x31   : > { %p495_p11 = pnand %p494_p8, %p644_p9  ;;  %p501_p1 = scmp.lt.s32.totalorder %s499_s30, %s493_s28 }
  0x32   : > { %v154_v4 = vmul.f32 -0.28782314, %v153_v3  ;;  %v158_v10 = vmul.f32 1.5707964, %v157_v8 }
  0x33   : > { %p496_p12 = pneg %p495_p11  ;;  %p502_p2 = por %p501_p1, %p500_p0 }
  0x34   : > { %v155_v5 = vmul.f32 1.442695, %v154_v4 }
  0x35   : > { %p503_p3 = pnand %p502_p2, %p496_p12 }
  0x36   : > { %459 = vpow2.f32 %v155_v5 }
  0x43   : > { %v460_v11 = vpop.eup %459 }
  0x44   : > { %v165_v12 = vmul.f32 %v460_v11, %v164_v9 }
  0x46   : > { %v691_v13 = vadd.f32 %v165_v12, %v158_v10 }
  0x48   : > { %v170_v14 = vand.u32 2139095040, %v691_v13  ;;  %v167_v16 = vand.u32 2147483647, %v691_v13  ;;  %vm169_vm7 = vcmp.lt.s32.totalorder %v691_v13, 0  ;;  %vm259_vm12 = vweird.f32 %v691_v13 }
  0x4a   : > { %v171_v15 = vshrl.u32 %v170_v14, 23  ;;  %v174_v19 = vand.u32 8388607, %v167_v16  ;;  %vm168_vm8 = vcmp.le.f32.partialorder %v167_v16, 0.7853982 }
  0x4c   : > { %v379_v17 = vadd.s32 4294967169, %v171_v15  ;;  %v175_v22 = vor.u32 8388608, %v174_v19 }
  0x4e   : > { %v177_v18 = vadd.s32 1, %v379_v17  ;;  %v215_v42 = vshll.u32 %v175_v22, 8 }
  0x50   : > { %vm178_vm0 = vcmp.gt.s32.totalorder %v177_v18, 0 }
  0x51   : > { %v179_v20 = vsel %vm178_vm0, %v177_v18, 0 }
  0x52   : > { %v181_v21 = vand.u32 31, %v179_v20  ;;  %v180_v23 = vshrl.u32 %v179_v20, 5 }
  0x54   : > { %v182_v24 = vsub.s32 32, %v181_v21  ;;  %v184_v26 = vshll.u32 %v576_v25, %v181_v21  ;;  %v187_v28 = vshll.u32 %v577_v27, %v181_v21  ;;  %v190_v30 = vshll.u32 %v578_v29, %v181_v21 }
  0x55   : > { %v193_v32 = vshll.u32 %v579_v31, %v181_v21  ;;  %v196_v34 = vshll.u32 %v580_v33, %v181_v21  ;;  %vm199_vm1 = vcmp.lt.s32.totalorder %v180_v23, 1  ;;  %vm202_vm2 = vcmp.lt.s32.totalorder %v180_v23, 4 }
  0x56   : > { %v183_v35 = vshrl.u32 %v576_v25, %v182_v24  ;;  %v185_v36 = vshrl.u32 %v577_v27, %v182_v24  ;;  %v188_v37 = vshrl.u32 %v578_v29, %v182_v24  ;;  %v191_v38 = vshrl.u32 %v579_v31, %v182_v24 }
  0x57   : > { %v194_v39 = vshrl.u32 %v580_v33, %v182_v24  ;;  %v197_v41 = vshrl.u32 %v581_v40, %v182_v24  ;;  %vm200_vm3 = vcmp.lt.s32.totalorder %v180_v23, 2  ;;  %vm201_vm4 = vcmp.lt.s32.totalorder %v180_v23, 3  ;;  %v271_v40 = vld [vmem:[%s685_s17] sm:$0xff] }
  0x58   : > { %v186_v43 = vor.u32 %v185_v36, %v184_v26  ;;  %v189_v44 = vor.u32 %v188_v37, %v187_v28  ;;  %v192_v45 = vor.u32 %v191_v38, %v190_v30 }
  0x59   : > { %v195_v46 = vor.u32 %v194_v39, %v193_v32  ;;  %v198_v47 = vor.u32 %v197_v41, %v196_v34 }
  0x5a   : > { %v203_v48 = vsel %vm199_vm1, %v183_v35, %v186_v43  ;;  %v204_v49 = vsel %vm202_vm2, %v192_v45, 2102212464  ;;  %v207_v50 = vsel %vm199_vm1, %v186_v43, %v189_v44  ;;  %v211_v51 = vsel %vm199_vm1, %v189_v44, %v192_v45 }
  0x5b   : > { %v205_v52 = vsel %vm201_vm4, %v189_v44, %v204_v49  ;;  %v208_v53 = vsel %vm202_vm2, %v195_v46, 920167782  ;;  %v212_v54 = vsel %vm202_vm2, %v198_v47, 1326507024 }
  0x5c   : > { %v209_v55 = vsel %vm201_vm4, %v192_v45, %v208_v53  ;;  %v213_v56 = vsel %vm201_vm4, %v195_v46, %v212_v54  ;;  %v206_v57 = vsel %vm200_vm3, %v203_v48, %v205_v52 }
  0x5d   : > { %v210_v58 = vsel %vm200_vm3, %v207_v50, %v209_v55  ;;  %v214_v59 = vsel %vm200_vm3, %v211_v51, %v213_v56  ;;  %v222_v0 = vmul.u32 %v215_v42, %v206_v57 }
  0x5e   : > { %v697_v60 = vmul.u32.u64.low %v215_v42, %v214_v59  ;;  %v698_v61 = vmul.u32.u64.high %v215_v42, %v214_v59, %v697_v60  ;;  %v700_v62 = vmul.u32.u64.low %v215_v42, %v210_v58  ;;  %v701_v63 = vmul.u32.u64.high %v215_v42, %v210_v58, %v700_v62 }
  0x60   : > { %vm224_vm5 = vc.u32 %v698_v61, %v700_v62  ;;  %v225_v1 = vadd.s32 1, %v701_v63  ;;  %v223_v12 = vadd.s32 %v700_v62, %v698_v61 }
  0x62   : > { %v226_v2 = vsel %vm224_vm5, %v225_v1, %v701_v63 }
  0x63   : > { %v227_v3 = vadd.s32 %v226_v2, %v222_v0 }
  0x65   : > { %v228_v4 = vadd.s32 536870912, %v227_v3 }
  0x67   : > { %v229_v5 = vshrl.u32 %v228_v4, 30 }
  0x69   : > { %v230_v6 = vshll.u32 %v229_v5, 30  ;;  %v253_v27 = vsub.s32 4, %v229_v5 }
  0x6b   : > { %v231_v7 = vsub.s32 %v227_v3, %v230_v6  ;;  %v254_v30 = vsel %vm169_vm7, %v253_v27, %v229_v5 }
  0x6c   : > { %v256_v32 = vsel %vm168_vm8, 0, %v254_v30 }
  0x6d   : > { %v233_v8 = vsub.s32 0, %v231_v7  ;;  %v260_v33 = vadd.s32 3, %v256_v32 }
  0x6f   : > { %v380_v9 = vmin.u32 %v233_v8, %v231_v7  ;;  %v261_v34 = vand.u32 3, %v260_v33 }
  0x71   : > { %v235_v10 = vclz %v380_v9  ;;  %vm266_vm9 = vcmp.eq.s32.totalorder %v261_v34, 2  ;;  %vm263_vm10 = vcmp.eq.s32.totalorder %v261_v34, 0  ;;  %vm262_vm11 = vcmp.lt.s32.totalorder %v261_v34, 2 }
  0x73   : > { %v381_v11 = vadd.s32 4294967294, %v235_v10 }
  0x75   : > { %vm382_vm6 = vcmp.lt.s32.totalorder %v381_v11, 0 }
  0x76   : > { %v238_v14 = vsel %vm382_vm6, 0, %v381_v11 }
  0x77   : > { %v239_v15 = vsub.s32 32, %v238_v14  ;;  %v240_v17 = vshll.u32 %v231_v7, %v238_v14  ;;  %v243_v18 = vsub.s32 4294967266, %v238_v14 }
  0x79   : > { %v241_v19 = vshrl.u32 %v223_v12, %v239_v15  ;;  %v244_v20 = vadd.s32 127, %v243_v18 }
  0x7b   : > { %v242_v21 = vor.u32 %v241_v19, %v240_v17  ;;  %v245_v22 = vshll.u32 %v244_v20, 23 }
  0x7d   : > { %v246_v23 = vor.u32 4788187, %v245_v22  ;;  %v249_v24 = vcvt.s32.f32 %v242_v21 }
  0x7f   : > { %v247_v25 = vand.u32 2147483647, %v246_v23 }
  0x81   : > { %v250_v26 = vmul.f32 %v249_v24, %v247_v25 }
  0x83   : > { %v251_v28 = vxor.u32 2147483648, %v250_v26 }
  0x85   : > { %v252_v29 = vsel %vm169_vm7, %v251_v28, %v250_v26 }
  0x86   : > { %v255_v31 = vsel %vm168_vm8, %v691_v13, %v252_v29 }
  0x87   : > { %461 = vcosq.f32 %v255_v31 }
  0x88   : > { %463 = vsinq.f32 %v255_v31 }
  0x94   : > { %v462_v35 = vpop.eup %461 }
  0x95   : > { %v464_v36 = vpop.eup %463  ;;  %v267_v37 = vxor.u32 2147483648, %v462_v35 }
  0x96   : > { %v264_v16 = vxor.u32 2147483648, %v464_v36 }
  0x97   : > { %v268_v38 = vsel %vm266_vm9, %v267_v37, %v464_v36 }
  0x98   : > { %v265_v39 = vsel %vm263_vm10, %v462_v35, %v264_v16 }
  0x99   : > { %v269_v41 = vsel %vm262_vm11, %v265_v39, %v268_v38 }
  0x9a   : > { %v270_v42 = vsel %vm259_vm12, nan, %v269_v41 }
  0x9b   : > { %v272_v43 = vadd.f32 %v271_v40, %v270_v42 }
  0x9d   : > { %274 = vst.msk [vmem:[%s148_s18] sm:$0xff] %vm273_vm13, %v272_v43 }
  0x9e   : > { %506 = shalt.err (!%p503_p3)
}
  0x9f   : > { %s507_s2 = scalar_lea.hbm %s288_s26, 128  ;;  %s511_s5 = scalar_lea.hbm %s762_s1, 256 }
  0xa0   : > { %p508_p5 = scmp.ne.s32.totalorder %s288_s26, %s507_s2  ;;  %p512_p10 = scmp.lt.s32.totalorder %s288_s26, %s762_s1 }
  0xa1   : > { %p513_p4 = scmp.lt.s32.totalorder %s511_s5, %s507_s2 }
  0xa2   : > { %p509_p6 = pnand %p508_p5, %p644_p9 }
  0xa3   : > { %p514_p13 = por %p513_p4, %p512_p10 }
  0xa4   : > { %p510_p7 = pneg %p509_p6 }
  0xa6   : > { %p515_p8 = pnand %p514_p13, %p510_p7 }
  0xa8   : > { %518 = shalt.err (!%p515_p8)
}
  0xa9   : > { %393 = dma.vmem_to_hbm [thread:$0]  (%p644_p9), %s716_s22, 128, %s288_s26, %s276_s27  }
  0xaa PF: > { %s302_s15 = sand.u32 1, %s553_s6   ;;  %p768_p11 = scmp.ne.s32.totalorder %s766_s21, 0 }
  0xab   : > { %p769_p12 = scmp.ge.s32.totalorder %s573_s11, 2  ;;  %s303_s16 = scalar_lea.sflag [#allocation4], %s302_s15 }
  0xad   : > { %p400_p0 = pnand %p769_p12, %p768_p11 }
  0xaf   : > { %p401_p1 = pneg %p400_p0 }
  0xb1   : > { %548 = dma.done.wait (%p401_p1), %s303_s16, 128  }
  0xb2   : > { %550 = vsyncadd (%p401_p1), %s303_s16, 4294967168  ;;  %s17_s11 = sadd.s32 1, %s573_s11   ;;  %s770_s6 = smov %s557_s7 }
  0xb3   : > { %p14_p2 = scmp.ge.s32.totalorder %s17_s11, 4   ;;  %s771_s7 = smov %s561_s8 }
  0xb4   : > { %s772_s8 = smov %s649_s20  ;;  %s773_s9 = smov %s569_s10 }
  0xb5   : > { %s774_s10 = smov %s776_s14  ;;  %16 = sbr.rel (!%p14_p2) target bundleno = 6 (0x6), region = 69 }
  0xba   :  { %308 = vsyncpa [#allocation3], 1 }
  0xbb   :  { %310 = vsyncpa [#allocation3 + $0x1], 1 }
  0xbc   :  { %311 = vsyncpa [#allocation4], 1 }
  0xbd   :  { %313 = vsyncpa [#allocation4 + $0x1], 1 }

</bundles_post_ra>
